<compile_context>
chip_gen: v5e
topology: v5e:2x2
jax: 0.10.0
libtpu: 0.0.40
codegen_flags: <defaults>
</compile_context>

<pallas_src>
import functools

import jax
import jax.numpy as jnp
from jax.experimental import pallas as pl
from jax.experimental.pallas import tpu as pltpu


def _diffusion_loss_kernel(seq_len, x_ref, n_ref, sab_ref, somab_ref,
                           guide_ref, w1a_ref, w1b_ref, b1_ref, w2_ref, b2_ref,
                           out_ref):
    """Grid = (num_row_tiles,). Per-step refs:
       x_ref, n_ref    : VMEM (TR, H) f32   clean embeddings / gaussian noise rows
       sab_ref, somab_ref : VMEM (TR, 1) f32  sqrt(a_bar), sqrt(1-a_bar) per row
       guide_ref       : VMEM (BT, H) f32   one guidance vector per batch element
       w1a/w1b         : VMEM (H, 2H) bf16  W1[:H] / W1[H:]   (resident)
       b1              : VMEM (1, 2H) f32
       w2              : VMEM (2H, H) bf16  (resident)
       b2              : VMEM (1, H) f32
       out_ref         : VMEM (1, 1, H) f32 per-tile partial SSE (lane partials)
    """
    x = x_ref[...]                                   # (TR, H) f32
    nz = n_ref[...]                                  # (TR, H) f32

    # q(x_t | x_0): forward diffusion (f32 elementwise)
    noisy = sab_ref[...] * x + somab_ref[...] * nz   # (TR, H)

    # concat([noisy, guide], -1) @ W1 == noisy @ W1[:H] + guide @ W1[H:]
    h = jnp.dot(noisy.astype(jnp.bfloat16), w1a_ref[...],
                preferred_element_type=jnp.float32)  # (TR, 2H) f32

    # guide branch: one small matmul per batch element, broadcast over S rows
    gproj = (jnp.dot(guide_ref[...].astype(jnp.bfloat16), w1b_ref[...],
                     preferred_element_type=jnp.float32)
             + b1_ref[...])                          # (BT, 2H) f32
    bt, two_h = gproj.shape
    gb = jax.lax.broadcast_in_dim(gproj, (bt, seq_len, two_h), (0, 2))
    gb = gb.reshape(bt * seq_len, two_h)             # (TR, 2H)

    h = h + gb
    h = h * jax.nn.sigmoid(h)                        # SiLU (f32, EUP sigmoid)

    pred = (jnp.dot(h.astype(jnp.bfloat16), w2_ref[...],
                    preferred_element_type=jnp.float32)
            + b2_ref[...])                           # (TR, H) f32

    diff = nz - pred
    # per-tile partial SSE, reduced over sublanes only (lane partials kept);
    # the cheap final cross-lane sum happens in the wrapper.
    out_ref[...] = jnp.sum(diff * diff, axis=0, keepdims=True)[None]  # (1,1,H)


def _pick_batch_tile(batch, seq, max_rows=1024):
    """Largest divisor of `batch` whose row-tile (d*seq) fits max_rows and
    satisfies the (8, 128) sublane constraint (or covers the whole batch)."""
    best = batch  # fallback: whole problem in one tile
    for d in range(1, batch + 1):
        if batch % d != 0 or d * seq > max_rows:
            continue
        if d != batch and (d % 8 != 0 or (d * seq) % 8 != 0):
            continue
        best = d
    return best


def diffusion_mse_loss(x_emb, noise, guide_vec, alpha_bar_t, w1, b1, w2, b2):
    """x_emb, noise: (B,S,H) f32; guide_vec: (B,H) f32; alpha_bar_t: (B,) f32;
       w1: (2H,2H); b1: (2H,); w2: (2H,H); b2: (H,). Returns scalar MSE loss."""
    B, S, H = x_emb.shape
    R = B * S

    bt = _pick_batch_tile(B, S)      # batch elements per grid step
    tr = bt * S                      # rows per grid step
    num_tiles = B // bt

    # fold batch+seq into rows
    x2 = x_emb.reshape(R, H).astype(jnp.float32)
    n2 = noise.reshape(R, H).astype(jnp.float32)

    # per-row diffusion scale columns (computed once in the wrapper)
    sab_col = jnp.repeat(jnp.sqrt(alpha_bar_t)[:, None], S, axis=0)         # (R,1)
    somab_col = jnp.repeat(jnp.sqrt(1.0 - alpha_bar_t)[:, None], S, axis=0)  # (R,1)
    sab_col = sab_col.astype(jnp.float32)
    somab_col = somab_col.astype(jnp.float32)

    # pre-split W1 in the wrapper; store matmul weights in bf16
    w1a = w1[:H].astype(jnp.bfloat16)        # (H, 2H)
    w1b = w1[H:].astype(jnp.bfloat16)        # (H, 2H)
    w2b = w2.astype(jnp.bfloat16)            # (2H, H)
    b1_2d = b1.reshape(1, 2 * H).astype(jnp.float32)
    b2_2d = b2.reshape(1, H).astype(jnp.float32)
    guide_f32 = guide_vec.astype(jnp.float32)

    kernel = functools.partial(_diffusion_loss_kernel, S)
    partials = pl.pallas_call(
        kernel,
        out_shape=jax.ShapeDtypeStruct((num_tiles, 1, H), jnp.float32),
        grid_spec=pltpu.PrefetchScalarGridSpec(
            num_scalar_prefetch=0,
            grid=(num_tiles,),
            in_specs=[
                pl.BlockSpec((tr, H), lambda i: (i, 0)),      # x rows
                pl.BlockSpec((tr, H), lambda i: (i, 0)),      # noise rows
                pl.BlockSpec((tr, 1), lambda i: (i, 0)),      # sqrt(alpha_bar)
                pl.BlockSpec((tr, 1), lambda i: (i, 0)),      # sqrt(1-alpha_bar)
                pl.BlockSpec((bt, H), lambda i: (i, 0)),      # guide per batch elem
                pl.BlockSpec((H, 2 * H), lambda i: (0, 0)),   # W1[:H]  (resident)
                pl.BlockSpec((H, 2 * H), lambda i: (0, 0)),   # W1[H:]  (resident)
                pl.BlockSpec((1, 2 * H), lambda i: (0, 0)),   # b1
                pl.BlockSpec((2 * H, H), lambda i: (0, 0)),   # W2      (resident)
                pl.BlockSpec((1, H), lambda i: (0, 0)),       # b2
            ],
            out_specs=pl.BlockSpec((1, 1, H), lambda i: (i, 0, 0)),
        ),
        compiler_params=pltpu.CompilerParams(
            # independent per-tile partial sums -> parallel grid (v7x megacore)
            dimension_semantics=("parallel",)),
    )(x2, n2, sab_col, somab_col, guide_f32, w1a, w1b, b1_2d, w2b, b2_2d)

    return jnp.sum(partials) / jnp.float32(B * S * H)


if __name__ == "__main__":
    B, S, H = 2, 8, 32          # batch, seq_len, hidden_size
    item_num, n_steps = 50, 20  # vocab + diffusion schedule length

    key = jax.random.PRNGKey(0)
    (k_emb, k_w1, k_b1, k_w2, k_b2,
     k_x, k_g, k_t, k_n) = jax.random.split(key, 9)

    # deterministic "parameters" (synthetic init, not a checkpoint)
    item_emb_table = jax.random.normal(k_emb, (item_num + 2, H), jnp.float32) * 0.02
    item_emb_table = item_emb_table.at[0].set(0.0)     # padding_idx = 0
    w1 = jax.random.normal(k_w1, (2 * H, 2 * H), jnp.float32) * 0.02
    b1 = jax.random.normal(k_b1, (2 * H,), jnp.float32) * 0.02
    w2 = jax.random.normal(k_w2, (2 * H, H), jnp.float32) * 0.02
    b2 = jax.random.normal(k_b2, (H,), jnp.float32) * 0.02

    betas = jnp.linspace(1e-4, 0.02, n_steps, dtype=jnp.float32)
    alphas = 1.0 - betas
    alpha_bars = jnp.cumprod(alphas)

    # deterministic example inputs
    x = jax.random.randint(k_x, (B, S), 0, item_num + 1)        # item ids
    guidance = jax.random.randint(k_g, (B, S), 0, item_num + 1)
    t = jax.random.randint(k_t, (B,), 0, n_steps)

    # glue (embedding gathers, guidance mean, gaussian noise, schedule gather)
    # TODO(synk): torch.randn_like uses torch RNG; replaced with jax.random.normal.
    x_emb = item_emb_table[x]                                    # (B, S, H)
    g_emb = item_emb_table[guidance] * (guidance > 0)[..., None]
    guide_vec = g_emb.mean(axis=1)                               # (B, H)
    noise = jax.random.normal(k_n, x_emb.shape, jnp.float32)
    alpha_bar_t = alpha_bars[t]                                  # (B,)

    loss = diffusion_mse_loss(x_emb, noise, guide_vec, alpha_bar_t, w1, b1, w2, b2)
    loss = jax.block_until_ready(loss)

    # --- matched-precision reference (bf16 MXU operands, f32 accumulate) ---
    ab = alpha_bar_t[:, None, None]
    noisy_r = jnp.sqrt(ab) * x_emb + jnp.sqrt(1.0 - ab) * noise
    h_r = jnp.dot(noisy_r.reshape(-1, H).astype(jnp.bfloat16),
                  w1[:H].astype(jnp.bfloat16),
                  preferred_element_type=jnp.float32)
    g_r = jnp.dot(guide_vec.astype(jnp.bfloat16),
                  w1[H:].astype(jnp.bfloat16),
                  preferred_element_type=jnp.float32) + b1
    h_r = h_r + jnp.repeat(g_r, S, axis=0)
    h_r = h_r * jax.nn.sigmoid(h_r)
    p_r = (jnp.dot(h_r.astype(jnp.bfloat16), w2.astype(jnp.bfloat16),
                   preferred_element_type=jnp.float32) + b2).reshape(B, S, H)
    loss_ref = jnp.mean((noise - p_r) ** 2)

    # --- original full-f32 forward (torch semantics) for a loose sanity check ---
    pred_in = jnp.concatenate(
        [noisy_r, jnp.broadcast_to(guide_vec[:, None, :], (B, S, H))], axis=-1)
    h32 = pred_in.reshape(-1, 2 * H) @ w1 + b1
    h32 = h32 * jax.nn.sigmoid(h32)
    p32 = (h32 @ w2 + b2).reshape(B, S, H)
    loss_f32 = jnp.mean((noise - p32) ** 2)

    assert jnp.allclose(loss, loss_ref, rtol=1e-4, atol=1e-6), (loss, loss_ref)
    assert jnp.allclose(loss, loss_f32, rtol=1e-2, atol=1e-4), (loss, loss_f32)
    print("KERNEL_OK")
</pallas_src>

<mosaic_0001>
module attributes {stable_mosaic.version = 11 : i64} {
  func.func @_diffusion_loss_kernel(%arg0: i32, %arg1: memref<16x32xf32, #tpu.memory_space<vmem>>, %arg2: memref<16x32xf32, #tpu.memory_space<vmem>>, %arg3: memref<16x1xf32, #tpu.memory_space<vmem>>, %arg4: memref<16x1xf32, #tpu.memory_space<vmem>>, %arg5: memref<2x32xf32, #tpu.memory_space<vmem>>, %arg6: memref<32x64xbf16, #tpu.memory_space<vmem>>, %arg7: memref<32x64xbf16, #tpu.memory_space<vmem>>, %arg8: memref<1x64xf32, #tpu.memory_space<vmem>>, %arg9: memref<64x32xbf16, #tpu.memory_space<vmem>>, %arg10: memref<1x32xf32, #tpu.memory_space<vmem>>, %arg11: memref<1x1x32xf32, #tpu.memory_space<vmem>>) attributes {dimension_semantics = [#tpu.dimension_semantics<parallel>], iteration_bounds = array<i64: 1>, scalar_prefetch = 0 : i64, scratch_operands = 0 : i64, tpu.core_type = #tpu.core_type<tc>, window_params = [{transform_indices = @transform_0, window_bounds = array<i64: 16, 32>}, {transform_indices = @transform_1, window_bounds = array<i64: 16, 32>}, {transform_indices = @transform_2, window_bounds = array<i64: 16, 1>}, {transform_indices = @transform_3, window_bounds = array<i64: 16, 1>}, {transform_indices = @transform_4, window_bounds = array<i64: 2, 32>}, {pipeline_mode = #tpu.pipeline_mode<synchronous>, transform_indices = @transform_5, window_bounds = array<i64: 32, 64>}, {pipeline_mode = #tpu.pipeline_mode<synchronous>, transform_indices = @transform_6, window_bounds = array<i64: 32, 64>}, {pipeline_mode = #tpu.pipeline_mode<synchronous>, transform_indices = @transform_7, window_bounds = array<i64: 1, 64>}, {pipeline_mode = #tpu.pipeline_mode<synchronous>, transform_indices = @transform_8, window_bounds = array<i64: 64, 32>}, {pipeline_mode = #tpu.pipeline_mode<synchronous>, transform_indices = @transform_9, window_bounds = array<i64: 1, 32>}, {transform_indices = @transform_10, window_bounds = array<i64: 1, 1, 32>}]} {
    %c0 = arith.constant 0 : index
    %c0_0 = arith.constant 0 : index
    %0 = vector.load %arg1[%c0, %c0_0] : memref<16x32xf32, #tpu.memory_space<vmem>>, vector<16x32xf32>
    %c0_1 = arith.constant 0 : index
    %c0_2 = arith.constant 0 : index
    %1 = vector.load %arg2[%c0_1, %c0_2] : memref<16x32xf32, #tpu.memory_space<vmem>>, vector<16x32xf32>
    %c0_3 = arith.constant 0 : index
    %c0_4 = arith.constant 0 : index
    %2 = vector.load %arg3[%c0_3, %c0_4] : memref<16x1xf32, #tpu.memory_space<vmem>>, vector<16x1xf32>
    %3 = vector.broadcast %2 : vector<16x1xf32> to vector<16x32xf32>
    %4 = arith.mulf %3, %0 : vector<16x32xf32>
    %c0_5 = arith.constant 0 : index
    %c0_6 = arith.constant 0 : index
    %5 = vector.load %arg4[%c0_5, %c0_6] : memref<16x1xf32, #tpu.memory_space<vmem>>, vector<16x1xf32>
    %6 = vector.broadcast %5 : vector<16x1xf32> to vector<16x32xf32>
    %7 = arith.mulf %6, %1 : vector<16x32xf32>
    %8 = arith.addf %4, %7 : vector<16x32xf32>
    %9 = arith.truncf %8 : vector<16x32xf32> to vector<16x32xbf16>
    %c0_7 = arith.constant 0 : index
    %c0_8 = arith.constant 0 : index
    %10 = vector.load %arg6[%c0_7, %c0_8] : memref<32x64xbf16, #tpu.memory_space<vmem>>, vector<32x64xbf16>
    %cst = arith.constant dense<0.000000e+00> : vector<16x64xf32>
    %11 = tpu.matmul %9, %10, %cst {dimension_numbers = #tpu.dot_dimension_numbers<[1], [0], [0], [1], [0, 0, 1, 1], [], []>} : vector<16x32xbf16>, vector<32x64xbf16>, vector<16x64xf32> -> vector<16x64xf32>
    %c0_9 = arith.constant 0 : index
    %c0_10 = arith.constant 0 : index
    %12 = vector.load %arg5[%c0_9, %c0_10] : memref<2x32xf32, #tpu.memory_space<vmem>>, vector<2x32xf32>
    %13 = arith.truncf %12 : vector<2x32xf32> to vector<2x32xbf16>
    %c0_11 = arith.constant 0 : index
    %c0_12 = arith.constant 0 : index
    %14 = vector.load %arg7[%c0_11, %c0_12] : memref<32x64xbf16, #tpu.memory_space<vmem>>, vector<32x64xbf16>
    %cst_13 = arith.constant dense<0.000000e+00> : vector<2x64xf32>
    %15 = tpu.matmul %13, %14, %cst_13 {dimension_numbers = #tpu.dot_dimension_numbers<[1], [0], [0], [1], [0, 0, 1, 1], [], []>} : vector<2x32xbf16>, vector<32x64xbf16>, vector<2x64xf32> -> vector<2x64xf32>
    %c0_14 = arith.constant 0 : index
    %c0_15 = arith.constant 0 : index
    %16 = vector.load %arg8[%c0_14, %c0_15] : memref<1x64xf32, #tpu.memory_space<vmem>>, vector<1x64xf32>
    %17 = vector.broadcast %16 : vector<1x64xf32> to vector<2x64xf32>
    %18 = arith.addf %15, %17 : vector<2x64xf32>
    %19 = vector.shape_cast %18 : vector<2x64xf32> to vector<2x1x64xf32>
    %20 = vector.broadcast %19 : vector<2x1x64xf32> to vector<2x8x64xf32>
    %21 = vector.shape_cast %20 : vector<2x8x64xf32> to vector<16x64xf32>
    %22 = arith.addf %11, %21 : vector<16x64xf32>
    %23 = arith.negf %22 : vector<16x64xf32>
    %24 = math.exp %23 : vector<16x64xf32>
    %cst_16 = arith.constant 1.000000e+00 : f32
    %25 = vector.broadcast %cst_16 : f32 to vector<16x64xf32>
    %26 = arith.addf %25, %24 : vector<16x64xf32>
    %27 = arith.divf %25, %26 : vector<16x64xf32>
    %28 = arith.mulf %22, %27 : vector<16x64xf32>
    %29 = arith.truncf %28 : vector<16x64xf32> to vector<16x64xbf16>
    %c0_17 = arith.constant 0 : index
    %c0_18 = arith.constant 0 : index
    %30 = vector.load %arg9[%c0_17, %c0_18] : memref<64x32xbf16, #tpu.memory_space<vmem>>, vector<64x32xbf16>
    %cst_19 = arith.constant dense<0.000000e+00> : vector<16x32xf32>
    %31 = tpu.matmul %29, %30, %cst_19 {dimension_numbers = #tpu.dot_dimension_numbers<[1], [0], [0], [1], [0, 0, 1, 1], [], []>} : vector<16x64xbf16>, vector<64x32xbf16>, vector<16x32xf32> -> vector<16x32xf32>
    %c0_20 = arith.constant 0 : index
    %c0_21 = arith.constant 0 : index
    %32 = vector.load %arg10[%c0_20, %c0_21] : memref<1x32xf32, #tpu.memory_space<vmem>>, vector<1x32xf32>
    %33 = vector.broadcast %32 : vector<1x32xf32> to vector<16x32xf32>
    %34 = arith.addf %31, %33 : vector<16x32xf32>
    %35 = arith.subf %1, %34 : vector<16x32xf32>
    %36 = arith.mulf %35, %35 : vector<16x32xf32>
    %cst_22 = arith.constant dense<0.000000e+00> : vector<32xf32>
    %37 = vector.multi_reduction <add>, %36, %cst_22 [0] : vector<16x32xf32> to vector<32xf32>
    %38 = vector.shape_cast %37 : vector<32xf32> to vector<1x32xf32>
    %39 = vector.shape_cast %38 : vector<1x32xf32> to vector<1x1x32xf32>
    %c0_23 = arith.constant 0 : index
    %c0_24 = arith.constant 0 : index
    %c0_25 = arith.constant 0 : index
    %40 = vector.load %arg11[%c0_23, %c0_24, %c0_25] : memref<1x1x32xf32, #tpu.memory_space<vmem>>, vector<1x1x32xf32>
    tpu.vector_store %arg11[%c0_23, %c0_24, %c0_25], %39 {strides = array<i32>} : memref<1x1x32xf32, #tpu.memory_space<vmem>>, vector<1x1x32xf32>,
    return
  }
  func.func @transform_0(%arg0: i32) -> (i32, i32) {
    %c0_i32 = arith.constant 0 : i32
    %c0_i32_0 = arith.constant 0 : i32
    return %arg0, %c0_i32 : i32, i32
  }
  func.func @transform_1(%arg0: i32) -> (i32, i32) {
    %c0_i32 = arith.constant 0 : i32
    %c0_i32_0 = arith.constant 0 : i32
    return %arg0, %c0_i32 : i32, i32
  }
  func.func @transform_2(%arg0: i32) -> (i32, i32) {
    %c0_i32 = arith.constant 0 : i32
    %c0_i32_0 = arith.constant 0 : i32
    return %arg0, %c0_i32 : i32, i32
  }
  func.func @transform_3(%arg0: i32) -> (i32, i32) {
    %c0_i32 = arith.constant 0 : i32
    %c0_i32_0 = arith.constant 0 : i32
    return %arg0, %c0_i32 : i32, i32
  }
  func.func @transform_4(%arg0: i32) -> (i32, i32) {
    %c0_i32 = arith.constant 0 : i32
    %c0_i32_0 = arith.constant 0 : i32
    return %arg0, %c0_i32 : i32, i32
  }
  func.func @transform_5(%arg0: i32) -> (i32, i32) {
    %c0_i32 = arith.constant 0 : i32
    %c0_i32_0 = arith.constant 0 : i32
    %c0_i32_1 = arith.constant 0 : i32
    return %c0_i32, %c0_i32_0 : i32, i32
  }
  func.func @transform_6(%arg0: i32) -> (i32, i32) {
    %c0_i32 = arith.constant 0 : i32
    %c0_i32_0 = arith.constant 0 : i32
    %c0_i32_1 = arith.constant 0 : i32
    return %c0_i32, %c0_i32_0 : i32, i32
  }
  func.func @transform_7(%arg0: i32) -> (i32, i32) {
    %c0_i32 = arith.constant 0 : i32
    %c0_i32_0 = arith.constant 0 : i32
    %c0_i32_1 = arith.constant 0 : i32
    return %c0_i32, %c0_i32_0 : i32, i32
  }
  func.func @transform_8(%arg0: i32) -> (i32, i32) {
    %c0_i32 = arith.constant 0 : i32
    %c0_i32_0 = arith.constant 0 : i32
    %c0_i32_1 = arith.constant 0 : i32
    return %c0_i32, %c0_i32_0 : i32, i32
  }
  func.func @transform_9(%arg0: i32) -> (i32, i32) {
    %c0_i32 = arith.constant 0 : i32
    %c0_i32_0 = arith.constant 0 : i32
    %c0_i32_1 = arith.constant 0 : i32
    return %c0_i32, %c0_i32_0 : i32, i32
  }
  func.func @transform_10(%arg0: i32) -> (i32, i32, i32) {
    %c0_i32 = arith.constant 0 : i32
    %c0_i32_0 = arith.constant 0 : i32
    %c0_i32_1 = arith.constant 0 : i32
    return %arg0, %c0_i32, %c0_i32_0 : i32, i32, i32
  }
}

</mosaic_0001>

<bundles_post_ra>
// kernel: tpu_custom_call.1
= control target key start
LH: loop header
LB: loop body
LE: loop exit
PB: predicated region body
PF: predicated region fallthrough
CT: control target
= control target key end

     0   :  { %v361_v2 = vmov 0   ;;  %s490_s0 = inlined_call_operand.vmem [shape: f32[16,32], index: 0, kind: input, shape index: {}]   ;;  %s491_s1 = inlined_call_operand.vmem [shape: f32[16,32], index: 1, kind: input, shape index: {}]   ;;  %s492_s2 = inlined_call_operand.vmem [shape: f32[16,1], index: 2, kind: input, shape index: {}]   ;;  %s493_s3 = inlined_call_operand.vmem [shape: f32[16,1], index: 3, kind: input, shape index: {}]   ;;  %s494_s4 = inlined_call_operand.vmem [shape: f32[2,32], index: 4, kind: input, shape index: {}]   ;;  %s495_s5 = inlined_call_operand.vmem [shape: bf16[32,64], index: 5, kind: input, shape index: {}]   ;;  %s496_s6 = inlined_call_operand.vmem [shape: bf16[32,64], index: 6, kind: input, shape index: {}]   ;;  %s497_s7 = inlined_call_operand.vmem [shape: f32[1,64], index: 7, kind: input, shape index: {}]   ;;  %s498_s8 = inlined_call_operand.vmem [shape: bf16[64,32], index: 8, kind: input, shape index: {}]   ;;  %s499_s9 = inlined_call_operand.vmem [shape: f32[1,32], index: 9, kind: input, shape index: {}]   ;;  %s500_s10 = inlined_call_operand.hbm [shape: f32[1,1,32], index: 10, kind: output, shape index: {}]  }
   0x1   :  { %v55_v0 = vld [vmem:[%s493_s3] sm:$0xff]  ;;  %324 = vset.pattern.permute.xlu1 %v361_v2  ;;  %323 = vset.pattern.permute.xlu0 %v361_v2 }
   0x2   :  { %v41_v1 = vld [vmem:[%s492_s2] sm:$0xff]  ;;  %59 = vperm.xlu1 %324, %v55_v0  }
   0x3   :  { %45 = vperm.xlu0 %323, %v41_v1  }
   0x4   :  { %15 = vsyncpa [#allocation3], 0  ;;  %v56_v3 = vld [vmem:[%s493_s3 + $0x8] sm:$0xff]  ;;  %v315_v6 = vld [vmem:[%s496_s6] sm:$0xff]  ;;  %vm98_vm0 = vcmask 261120   ;;  %vm227_vm9 = vcmask 523264  }
   0x5   :  { %v42_v4 = vld [vmem:[%s492_s2 + $0x8] sm:$0xff]  ;;  %v76_v8 = vld [vmem:[%s494_s4] sm:$0x3]  ;;  %v320_v30 = vld [vmem:[%s498_s8 + $0x18] sm:$0xff]  ;;  %s267_s25 = sshll.u32 %s500_s10, 4  ;;  %vm258_vm10 = vcmask 253952   ;;  %s268_s25 = int_to_ptr.hbm [resolvable:$true] %s267_s25 }
   0x6   :  { %v316_v5 = vld [vmem:[%s496_s6 + $0x8] sm:$0xff]  ;;  %v77_v9 = vpack.c.bf16 %v76_v8, %v76_v8  ;;  %v313_v10 = vld [vmem:[%s495_s5] sm:$0xff]  ;;  %235 = vmatpush.bf16.msra.mxu2 %v320_v30  ;;  %v319_v32 = vld [vmem:[%s498_s8 + $0x10] sm:$0xff] }
   0x7   :  { %108 = vmatpush.bf16.msra.mxu0 %v316_v5  ;;  %v314_v7 = vld [vmem:[%s495_s5 + $0x8] sm:$0xff]  ;;  %v449_v13 = vld [vmem:[%s491_s1] sm:$0xff] }
   0x8   :  { %142 = vmatpush.bf16.msra.mxu1 %v314_v7  ;;  %v37_v14 = vld [vmem:[%s490_s0] sm:$0xff]  ;;  %v457_v15 = vld [vmem:[%s491_s1 + $0x8] sm:$0xff] }
   0x9   :  { %v38_v16 = vld [vmem:[%s490_s0 + $0x8] sm:$0xff]  ;;  %v325_v28 = vld [vmem:[%s497_s7] ss:$0 sm:$0xff] }
   0xa   :  { %64 = vperm.xlu1 %324, %v56_v3   ;;  %236 = vmatpush.bf16.msra.mxu2 %v319_v32  ;;  %v318_v36 = vld [vmem:[%s498_s8 + $0x8] sm:$0xff]  ;;  %v317_v39 = vld [vmem:[%s498_s8] sm:$0xff] }
   0xb   :  { %50 = vperm.xlu0 %323, %v42_v4   ;;  %109 = vmatpush.bf16.msra.mxu0 %v315_v6  ;;  %v326_v6 = vld [vmem:[%s499_s9] ss:$0 sm:$0xff]  ;;  %s362_s9 = smov [#allocation2]  }
   0xc   :  { %143 = vmatpush.bf16.msra.mxu1 %v313_v10  ;;  %s265_s22 = sshll.u32 %s362_s9, 4  ;;  %s266_s22 = int_to_ptr.vmem [resolvable:$true] %s265_s22 }
   0xe   :  { %284 = vmatmul.msk.bf16.vlgmr.msra.gmra.mxu0 %vm98_vm0, %v77_v9  ;;  %237 = vmatpush.bf16.msra.mxu2 %v318_v36 }
  0x12   :  { %238 = vmatpush.bf16.msra.mxu2 %v317_v39 }
  0x74   :  { %v60_v11 = vpop.permute.xlu1 %59 }
  0x75   :  { %v46_v12 = vpop.permute.xlu0 %45  ;;  %v67_v17 = vmul.f32 %v60_v11, %v449_v13 }
  0x76   :  { %v53_v18 = vmul.f32 %v46_v12, %v37_v14 }
  0x78   :  { %v69_v23 = vadd.f32 %v67_v17, %v53_v18 }
  0x7c   :  { %v65_v19 = vpop.permute.xlu1 %64 }
  0x7d   :  { %v51_v20 = vpop.permute.xlu0 %50  ;;  %v68_v21 = vmul.f32 %v65_v19, %v457_v15 }
  0x7e   :  { %v54_v22 = vmul.f32 %v51_v20, %v38_v16 }
  0x80   :  { %v70_v24 = vadd.f32 %v68_v21, %v54_v22 }
  0x82   :  { %v71_v25 = vpack.c.bf16 %v70_v24, %v69_v23 }
  0x84   :  { %293 = vmatmul.msk.bf16.vlgmr.msra.gmra.mxu1 %vm98_vm0, %v71_v25 }
  0x8b   :  { %v111_v26 = vpop.f32.mrf.mxu0 }
  0x8c   :  { %v112_v29 = vadd.f32 %v325_v28, %v111_v26 }
  0x8e   :  { %v117_v31 = vperm.slane %v112_v29, 0  ;;  %v116_v34 = vrot.slane %v112_v29, 1 }
  0x90   :  { %v118_v38 = vperm.slane %v116_v34, 0 }
  0x93   :  { %v113_v27 = vpop.f32.mrf.mxu0 }
 0x101   :  { %v145_v33 = vpop.f32.mrf.mxu1 }
 0x102   :  { %v146_v35 = vadd.f32 %v145_v33, %v117_v31 }
 0x104   :  { %v294_v37 = vmul.f32 -1.442695, %v146_v35 }
 0x106   :  { %327 = vpow2.f32 %v294_v37 }
 0x109   :  { %v147_v40 = vpop.f32.mrf.mxu1 }
 0x10a   :  { %v148_v41 = vadd.f32 %v147_v40, %v118_v38 }
 0x10c   :  { %v328_v42 = vpop.eup %327  ;;  %v295_v43 = vmul.f32 -1.442695, %v148_v41 }
 0x10d   :  { %v156_v44 = vadd.f32 1.0, %v328_v42 }
 0x10e   :  { %329 = vpow2.f32 %v295_v43 }
 0x10f   :  { %331 = vrcp.f32 %v156_v44  ;;  %v169_v54 = vand.u32 2147483648, %v156_v44  ;;  %vm163_vm2 = vweird.f32 %v156_v44  ;;  %v167_v55 = vand.u32 2147483647, %v156_v44 }
 0x111   :  { %v170_v61 = vor.u32 1.1754944e-38, %v169_v54  ;;  %vm168_vm5 = vcmp.eq.f32.partialorder %v167_v55, 8.507059e+37 }
 0x114   :  { %v330_v45 = vpop.eup %329 }
 0x115   :  { %v332_v46 = vpop.eup %331  ;;  %v157_v47 = vadd.f32 1.0, %v330_v45 }
 0x116   :  { %v159_v48 = vmul.f32 %v332_v46, %v156_v44  ;;  %vm164_vm1 = vweird.f32 %v332_v46 }
 0x117   :  { %333 = vrcp.f32 %v157_v47  ;;  %vm165_vm3 = vmor %vm163_vm2, %vm164_vm1  ;;  %v184_v57 = vand.u32 2147483648, %v157_v47  ;;  %v182_v60 = vand.u32 2147483647, %v157_v47  ;;  %vm178_vm6 = vweird.f32 %v157_v47 }
 0x118   :  { %v160_v49 = vsub.f32 1.0, %v159_v48 }
 0x119   :  { %v185_v0 = vor.u32 1.1754944e-38, %v184_v57  ;;  %vm183_vm8 = vcmp.eq.f32.partialorder %v182_v60, 8.507059e+37 }
 0x11a   :  { %v161_v50 = vmul.f32 %v332_v46, %v160_v49 }
 0x11c   :  { %v162_v52 = vadd.f32 %v332_v46, %v161_v50 }
 0x11d   :  { %v334_v51 = vpop.eup %333 }
 0x11e   :  { %v174_v53 = vmul.f32 %v334_v51, %v157_v47  ;;  %v166_v58 = vsel %vm165_vm3, %v332_v46, %v162_v52  ;;  %vm179_vm4 = vweird.f32 %v334_v51 }
 0x11f   :  { %v171_v63 = vsel %vm168_vm5, %v170_v61, %v166_v58  ;;  %vm180_vm7 = vmor %vm178_vm6, %vm179_vm4 }
 0x120   :  { %v175_v56 = vsub.f32 1.0, %v174_v53  ;;  %v188_v3 = vmul.f32 %v171_v63, %v146_v35 }
 0x122   :  { %v176_v59 = vmul.f32 %v334_v51, %v175_v56 }
 0x124   :  { %v177_v62 = vadd.f32 %v334_v51, %v176_v59 }
 0x126   :  { %v181_v1 = vsel %vm180_vm7, %v334_v51, %v177_v62 }
 0x127   :  { %v186_v2 = vsel %vm183_vm8, %v185_v0, %v181_v1 }
 0x128   :  { %v189_v4 = vmul.f32 %v186_v2, %v148_v41 }
 0x12a   :  { %v190_v5 = vpack.c.bf16 %v189_v4, %v188_v3 }
 0x12c   :  { %312 = vmatmul.msk.bf16.vlgmr.msra.gmra.mxu2 %vm227_vm9, %v190_v5 }
 0x1af   :  { %v240_v7 = vpop.f32.mrf.mxu2 }
 0x1b0   :  { %v241_v8 = vadd.f32 %v326_v6, %v240_v7 }
 0x1b2   :  { %v245_v9 = vsub.f32 %v449_v13, %v241_v8 }
 0x1b4   :  { %v247_v12 = vmul.f32 %v245_v9, %v245_v9 }
 0x1b6   :  { %v249_v17 = vsel %vm98_vm0, %v247_v12, 0.0 }
 0x1b7   :  { %v242_v10 = vpop.f32.mrf.mxu2 }
 0x1b8   :  { %v243_v11 = vadd.f32 %v326_v6, %v242_v10 }
 0x1ba   :  { %v246_v14 = vsub.f32 %v457_v15, %v243_v11 }
 0x1bc   :  { %v248_v16 = vmul.f32 %v246_v14, %v246_v14 }
 0x1be   :  { %v250_v18 = vsel %vm98_vm0, %v248_v16, 0.0 }
 0x1bf   :  { %v251_v19 = vadd.f32 %v250_v18, %v249_v17 }
 0x1c1   :  { %v252_v20 = vrot.slane %v251_v19, 4 }
 0x1c3   :  { %v253_v21 = vadd.f32 %v252_v20, %v251_v19 }
 0x1c5   :  { %v254_v22 = vrot.slane %v253_v21, 2 }
 0x1c7   :  { %v255_v23 = vadd.f32 %v254_v22, %v253_v21 }
 0x1c9   :  { %v256_v13 = vrot.slane %v255_v23, 1 }
 0x1cb   :  { %v257_v24 = vadd.f32 %v256_v13, %v255_v23 }
 0x1cd   :  { %259 = vst.msk [vmem:[#allocation2] sm:$0x1] %vm258_vm10, %v257_v24 }
 0x1ce   :  { %270 = dma.vmem_to_hbm [thread:$0]  %s266_s22, 16, %s268_s25, [#allocation3]  }
 0x1cf   :  { %359 = dma.done.wait [#allocation3], 16  }
 0x1d0   :  { %360 = vsyncadd [#allocation3], 4294967280 }
 0x1d1   :  { %275 = vsyncpa [#allocation3], 1 }

</bundles_post_ra>
